<compile_context>
chip_gen: v7x
topology: tpu7x:2x2x1
jax: 0.10.0
libtpu: 0.0.40
codegen_flags: <defaults>
</compile_context>

<pallas_src>
import jax
import jax.numpy as jnp
from jax import lax
from jax.experimental import pallas as pl
from jax.experimental.pallas import tpu as pltpu


LANE_TILE = 512  # lanes of M per grid step (multiple of 128)


def _gelu_linear_kernel(wb_ref, xt_ref, ot_ref):
    # wb_ref: ((K+1)*N,) f32 in SMEM; wb[k*N + n] = W[n, k] for k < K,
    #         wb[K*N + n] = bias[n].
    # xt_ref: (K, TM) f32 in VMEM   (features on sublanes, M on lanes)
    # ot_ref: (N, TM) f32 in VMEM
    k_dim, tm = xt_ref.shape
    n_dim = ot_ref.shape[0]

    xr = jnp.maximum(xt_ref[...], 0.0)                   # relu(x), (K, TM)

    # Linear: per-output-row scalar-weight FMAs on the VPU.  Weights/bias are
    # SMEM scalars (splat is free); rows of xr are lane-dense (1, TM) slices.
    rows = []
    for n in range(n_dim):
        acc = wb_ref[n] * xr[0:1, :] + wb_ref[k_dim * n_dim + n]
        for k in range(1, k_dim):
            acc = acc + wb_ref[k * n_dim + n] * xr[k:k + 1, :]
        rows.append(acc)
    v1 = jnp.concatenate(rows, axis=0)                   # (N, TM)

    # exact GELU tail, dense over (N, TM), single contiguous store.
    v2 = v1 * 0.5
    v3 = v1 * 0.7071067811865476
    v4 = lax.erf(v3)
    ot_ref[...] = (v2 * (v4 + 1.0)).astype(ot_ref.dtype)


def pack_params(weight, bias):
    """One-time packing (module-init analogue): PyTorch-layout weight (N, K)
    and bias (N,) -> flat ((K+1)*N,) f32 array: W^T rows first, bias row last."""
    wt = jnp.transpose(weight).astype(jnp.float32)        # (K, N), wt[k, n] = W[n, k]
    packed = jnp.concatenate([wt, bias.astype(jnp.float32)[None, :]], axis=0)
    return packed.reshape(-1)                             # ((K+1)*N,)


def gelu_linear(x, wb_flat):
    """x: (..., K) array; wb_flat: ((K+1)*N,) packed weight+bias (see pack_params)."""
    k = x.shape[-1]
    n = wb_flat.shape[0] // (k + 1)
    lead = x.shape[:-1]
    xm = x.reshape((-1, k)).astype(jnp.float32)            # (M, K)
    m = xm.shape[0]

    # Pad M up to a lane-friendly multiple and transpose to lane-dense (K, M).
    if m <= LANE_TILE:
        tile = max(128, ((m + 127) // 128) * 128)
        m_pad = tile
    else:
        tile = LANE_TILE
        m_pad = ((m + tile - 1) // tile) * tile
    if m_pad != m:
        xm = jnp.pad(xm, ((0, m_pad - m), (0, 0)))
    xt = xm.T                                              # (K, m_pad)

    out_t = pl.pallas_call(
        _gelu_linear_kernel,
        out_shape=jax.ShapeDtypeStruct((n, m_pad), jnp.float32),
        grid=(m_pad // tile,),
        in_specs=[
            pl.BlockSpec(memory_space=pltpu.MemorySpace.SMEM),   # packed weights+bias
            pl.BlockSpec((k, tile), lambda i: (0, i)),           # x^T tile (lane-dense)
        ],
        out_specs=pl.BlockSpec((n, tile), lambda i: (0, i)),
        compiler_params=pltpu.CompilerParams(
            dimension_semantics=("parallel",),
            vmem_limit_bytes=32 * 1024 * 1024,
        ),
    )(wb_flat, xt)

    out = out_t.T[:m]                                      # (M, N)
    return out.reshape(lead + (n,))


def reference(x, weight, bias):
    v1 = jnp.maximum(x, 0.0) @ weight.T + bias
    v2 = v1 * 0.5
    v3 = v1 * 0.7071067811865476
    v4 = lax.erf(v3)
    return v2 * (v4 + 1.0)


if __name__ == "__main__":
    key = jax.random.PRNGKey(0)
    kx, kw, kb = jax.random.split(key, 3)

    # batch=2, seq=8, features=4  -> output (2, 8, 8)
    x = jax.random.normal(kx, (2, 8, 4), dtype=jnp.float32)

    # Deterministic Linear(4, 8) parameters (PyTorch layout: weight (out, in)).
    bound = 1.0 / jnp.sqrt(4.0)
    weight = jax.random.uniform(kw, (8, 4), minval=-bound, maxval=bound,
                                dtype=jnp.float32)
    bias = jax.random.uniform(kb, (8,), minval=-bound, maxval=bound,
                              dtype=jnp.float32)

    wb = pack_params(weight, bias)      # done once (module-init analogue)

    out = gelu_linear(x, wb)
    out = jax.block_until_ready(out)

    ref = reference(x, weight, bias)
    assert out.shape == (2, 8, 8)
    assert jnp.allclose(out, ref, atol=1e-5, rtol=1e-5)

    print("KERNEL_OK")
</pallas_src>

<mosaic_0001>
module attributes {stable_mosaic.version = 11 : i64} {
  func.func @_gelu_linear_kernel(%arg0: i32, %arg1: memref<40xf32, #tpu.memory_space<smem>>, %arg2: memref<4x128xf32, #tpu.memory_space<vmem>>, %arg3: memref<8x128xf32, #tpu.memory_space<vmem>>) attributes {dimension_semantics = [#tpu.dimension_semantics<parallel>], iteration_bounds = array<i64: 1>, scalar_prefetch = 0 : i64, scratch_operands = 0 : i64, tpu.core_type = #tpu.core_type<tc>, window_params = [{transform_indices = @transform_0, window_bounds = array<i64: 40>}, {transform_indices = @transform_1, window_bounds = array<i64: 4, 128>}, {transform_indices = @transform_2, window_bounds = array<i64: 8, 128>}]} {
    %c0 = arith.constant 0 : index
    %c0_0 = arith.constant 0 : index
    %0 = vector.load %arg2[%c0, %c0_0] : memref<4x128xf32, #tpu.memory_space<vmem>>, vector<4x128xf32>
    %cst = arith.constant 0.000000e+00 : f32
    %1 = vector.broadcast %cst : f32 to vector<4x128xf32>
    %2 = arith.maximumf %0, %1 : vector<4x128xf32>
    %c0_1 = arith.constant 0 : index
    %3 = memref.load %arg1[%c0_1] : memref<40xf32, #tpu.memory_space<smem>>
    %4 = vector.extract_strided_slice %2 {offsets = [0, 0], sizes = [1, 128], strides = [1, 1]} : vector<4x128xf32> to vector<1x128xf32>
    %5 = vector.broadcast %3 : f32 to vector<1x128xf32>
    %6 = arith.mulf %5, %4 : vector<1x128xf32>
    %c32 = arith.constant 32 : index
    %7 = memref.load %arg1[%c32] : memref<40xf32, #tpu.memory_space<smem>>
    %8 = vector.broadcast %7 : f32 to vector<1x128xf32>
    %9 = arith.addf %6, %8 : vector<1x128xf32>
    %c8 = arith.constant 8 : index
    %10 = memref.load %arg1[%c8] : memref<40xf32, #tpu.memory_space<smem>>
    %11 = vector.extract_strided_slice %2 {offsets = [1, 0], sizes = [1, 128], strides = [1, 1]} : vector<4x128xf32> to vector<1x128xf32>
    %12 = vector.broadcast %10 : f32 to vector<1x128xf32>
    %13 = arith.mulf %12, %11 : vector<1x128xf32>
    %14 = arith.addf %9, %13 : vector<1x128xf32>
    %c16 = arith.constant 16 : index
    %15 = memref.load %arg1[%c16] : memref<40xf32, #tpu.memory_space<smem>>
    %16 = vector.extract_strided_slice %2 {offsets = [2, 0], sizes = [1, 128], strides = [1, 1]} : vector<4x128xf32> to vector<1x128xf32>
    %17 = vector.broadcast %15 : f32 to vector<1x128xf32>
    %18 = arith.mulf %17, %16 : vector<1x128xf32>
    %19 = arith.addf %14, %18 : vector<1x128xf32>
    %c24 = arith.constant 24 : index
    %20 = memref.load %arg1[%c24] : memref<40xf32, #tpu.memory_space<smem>>
    %21 = vector.extract_strided_slice %2 {offsets = [3, 0], sizes = [1, 128], strides = [1, 1]} : vector<4x128xf32> to vector<1x128xf32>
    %22 = vector.broadcast %20 : f32 to vector<1x128xf32>
    %23 = arith.mulf %22, %21 : vector<1x128xf32>
    %24 = arith.addf %19, %23 : vector<1x128xf32>
    %c1 = arith.constant 1 : index
    %25 = memref.load %arg1[%c1] : memref<40xf32, #tpu.memory_space<smem>>
    %26 = vector.extract_strided_slice %2 {offsets = [0, 0], sizes = [1, 128], strides = [1, 1]} : vector<4x128xf32> to vector<1x128xf32>
    %27 = vector.broadcast %25 : f32 to vector<1x128xf32>
    %28 = arith.mulf %27, %26 : vector<1x128xf32>
    %c33 = arith.constant 33 : index
    %29 = memref.load %arg1[%c33] : memref<40xf32, #tpu.memory_space<smem>>
    %30 = vector.broadcast %29 : f32 to vector<1x128xf32>
    %31 = arith.addf %28, %30 : vector<1x128xf32>
    %c9 = arith.constant 9 : index
    %32 = memref.load %arg1[%c9] : memref<40xf32, #tpu.memory_space<smem>>
    %33 = vector.extract_strided_slice %2 {offsets = [1, 0], sizes = [1, 128], strides = [1, 1]} : vector<4x128xf32> to vector<1x128xf32>
    %34 = vector.broadcast %32 : f32 to vector<1x128xf32>
    %35 = arith.mulf %34, %33 : vector<1x128xf32>
    %36 = arith.addf %31, %35 : vector<1x128xf32>
    %c17 = arith.constant 17 : index
    %37 = memref.load %arg1[%c17] : memref<40xf32, #tpu.memory_space<smem>>
    %38 = vector.extract_strided_slice %2 {offsets = [2, 0], sizes = [1, 128], strides = [1, 1]} : vector<4x128xf32> to vector<1x128xf32>
    %39 = vector.broadcast %37 : f32 to vector<1x128xf32>
    %40 = arith.mulf %39, %38 : vector<1x128xf32>
    %41 = arith.addf %36, %40 : vector<1x128xf32>
    %c25 = arith.constant 25 : index
    %42 = memref.load %arg1[%c25] : memref<40xf32, #tpu.memory_space<smem>>
    %43 = vector.extract_strided_slice %2 {offsets = [3, 0], sizes = [1, 128], strides = [1, 1]} : vector<4x128xf32> to vector<1x128xf32>
    %44 = vector.broadcast %42 : f32 to vector<1x128xf32>
    %45 = arith.mulf %44, %43 : vector<1x128xf32>
    %46 = arith.addf %41, %45 : vector<1x128xf32>
    %c2 = arith.constant 2 : index
    %47 = memref.load %arg1[%c2] : memref<40xf32, #tpu.memory_space<smem>>
    %48 = vector.extract_strided_slice %2 {offsets = [0, 0], sizes = [1, 128], strides = [1, 1]} : vector<4x128xf32> to vector<1x128xf32>
    %49 = vector.broadcast %47 : f32 to vector<1x128xf32>
    %50 = arith.mulf %49, %48 : vector<1x128xf32>
    %c34 = arith.constant 34 : index
    %51 = memref.load %arg1[%c34] : memref<40xf32, #tpu.memory_space<smem>>
    %52 = vector.broadcast %51 : f32 to vector<1x128xf32>
    %53 = arith.addf %50, %52 : vector<1x128xf32>
    %c10 = arith.constant 10 : index
    %54 = memref.load %arg1[%c10] : memref<40xf32, #tpu.memory_space<smem>>
    %55 = vector.extract_strided_slice %2 {offsets = [1, 0], sizes = [1, 128], strides = [1, 1]} : vector<4x128xf32> to vector<1x128xf32>
    %56 = vector.broadcast %54 : f32 to vector<1x128xf32>
    %57 = arith.mulf %56, %55 : vector<1x128xf32>
    %58 = arith.addf %53, %57 : vector<1x128xf32>
    %c18 = arith.constant 18 : index
    %59 = memref.load %arg1[%c18] : memref<40xf32, #tpu.memory_space<smem>>
    %60 = vector.extract_strided_slice %2 {offsets = [2, 0], sizes = [1, 128], strides = [1, 1]} : vector<4x128xf32> to vector<1x128xf32>
    %61 = vector.broadcast %59 : f32 to vector<1x128xf32>
    %62 = arith.mulf %61, %60 : vector<1x128xf32>
    %63 = arith.addf %58, %62 : vector<1x128xf32>
    %c26 = arith.constant 26 : index
    %64 = memref.load %arg1[%c26] : memref<40xf32, #tpu.memory_space<smem>>
    %65 = vector.extract_strided_slice %2 {offsets = [3, 0], sizes = [1, 128], strides = [1, 1]} : vector<4x128xf32> to vector<1x128xf32>
    %66 = vector.broadcast %64 : f32 to vector<1x128xf32>
    %67 = arith.mulf %66, %65 : vector<1x128xf32>
    %68 = arith.addf %63, %67 : vector<1x128xf32>
    %c3 = arith.constant 3 : index
    %69 = memref.load %arg1[%c3] : memref<40xf32, #tpu.memory_space<smem>>
    %70 = vector.extract_strided_slice %2 {offsets = [0, 0], sizes = [1, 128], strides = [1, 1]} : vector<4x128xf32> to vector<1x128xf32>
    %71 = vector.broadcast %69 : f32 to vector<1x128xf32>
    %72 = arith.mulf %71, %70 : vector<1x128xf32>
    %c35 = arith.constant 35 : index
    %73 = memref.load %arg1[%c35] : memref<40xf32, #tpu.memory_space<smem>>
    %74 = vector.broadcast %73 : f32 to vector<1x128xf32>
    %75 = arith.addf %72, %74 : vector<1x128xf32>
    %c11 = arith.constant 11 : index
    %76 = memref.load %arg1[%c11] : memref<40xf32, #tpu.memory_space<smem>>
    %77 = vector.extract_strided_slice %2 {offsets = [1, 0], sizes = [1, 128], strides = [1, 1]} : vector<4x128xf32> to vector<1x128xf32>
    %78 = vector.broadcast %76 : f32 to vector<1x128xf32>
    %79 = arith.mulf %78, %77 : vector<1x128xf32>
    %80 = arith.addf %75, %79 : vector<1x128xf32>
    %c19 = arith.constant 19 : index
    %81 = memref.load %arg1[%c19] : memref<40xf32, #tpu.memory_space<smem>>
    %82 = vector.extract_strided_slice %2 {offsets = [2, 0], sizes = [1, 128], strides = [1, 1]} : vector<4x128xf32> to vector<1x128xf32>
    %83 = vector.broadcast %81 : f32 to vector<1x128xf32>
    %84 = arith.mulf %83, %82 : vector<1x128xf32>
    %85 = arith.addf %80, %84 : vector<1x128xf32>
    %c27 = arith.constant 27 : index
    %86 = memref.load %arg1[%c27] : memref<40xf32, #tpu.memory_space<smem>>
    %87 = vector.extract_strided_slice %2 {offsets = [3, 0], sizes = [1, 128], strides = [1, 1]} : vector<4x128xf32> to vector<1x128xf32>
    %88 = vector.broadcast %86 : f32 to vector<1x128xf32>
    %89 = arith.mulf %88, %87 : vector<1x128xf32>
    %90 = arith.addf %85, %89 : vector<1x128xf32>
    %c4 = arith.constant 4 : index
    %91 = memref.load %arg1[%c4] : memref<40xf32, #tpu.memory_space<smem>>
    %92 = vector.extract_strided_slice %2 {offsets = [0, 0], sizes = [1, 128], strides = [1, 1]} : vector<4x128xf32> to vector<1x128xf32>
    %93 = vector.broadcast %91 : f32 to vector<1x128xf32>
    %94 = arith.mulf %93, %92 : vector<1x128xf32>
    %c36 = arith.constant 36 : index
    %95 = memref.load %arg1[%c36] : memref<40xf32, #tpu.memory_space<smem>>
    %96 = vector.broadcast %95 : f32 to vector<1x128xf32>
    %97 = arith.addf %94, %96 : vector<1x128xf32>
    %c12 = arith.constant 12 : index
    %98 = memref.load %arg1[%c12] : memref<40xf32, #tpu.memory_space<smem>>
    %99 = vector.extract_strided_slice %2 {offsets = [1, 0], sizes = [1, 128], strides = [1, 1]} : vector<4x128xf32> to vector<1x128xf32>
    %100 = vector.broadcast %98 : f32 to vector<1x128xf32>
    %101 = arith.mulf %100, %99 : vector<1x128xf32>
    %102 = arith.addf %97, %101 : vector<1x128xf32>
    %c20 = arith.constant 20 : index
    %103 = memref.load %arg1[%c20] : memref<40xf32, #tpu.memory_space<smem>>
    %104 = vector.extract_strided_slice %2 {offsets = [2, 0], sizes = [1, 128], strides = [1, 1]} : vector<4x128xf32> to vector<1x128xf32>
    %105 = vector.broadcast %103 : f32 to vector<1x128xf32>
    %106 = arith.mulf %105, %104 : vector<1x128xf32>
    %107 = arith.addf %102, %106 : vector<1x128xf32>
    %c28 = arith.constant 28 : index
    %108 = memref.load %arg1[%c28] : memref<40xf32, #tpu.memory_space<smem>>
    %109 = vector.extract_strided_slice %2 {offsets = [3, 0], sizes = [1, 128], strides = [1, 1]} : vector<4x128xf32> to vector<1x128xf32>
    %110 = vector.broadcast %108 : f32 to vector<1x128xf32>
    %111 = arith.mulf %110, %109 : vector<1x128xf32>
    %112 = arith.addf %107, %111 : vector<1x128xf32>
    %c5 = arith.constant 5 : index
    %113 = memref.load %arg1[%c5] : memref<40xf32, #tpu.memory_space<smem>>
    %114 = vector.extract_strided_slice %2 {offsets = [0, 0], sizes = [1, 128], strides = [1, 1]} : vector<4x128xf32> to vector<1x128xf32>
    %115 = vector.broadcast %113 : f32 to vector<1x128xf32>
    %116 = arith.mulf %115, %114 : vector<1x128xf32>
    %c37 = arith.constant 37 : index
    %117 = memref.load %arg1[%c37] : memref<40xf32, #tpu.memory_space<smem>>
    %118 = vector.broadcast %117 : f32 to vector<1x128xf32>
    %119 = arith.addf %116, %118 : vector<1x128xf32>
    %c13 = arith.constant 13 : index
    %120 = memref.load %arg1[%c13] : memref<40xf32, #tpu.memory_space<smem>>
    %121 = vector.extract_strided_slice %2 {offsets = [1, 0], sizes = [1, 128], strides = [1, 1]} : vector<4x128xf32> to vector<1x128xf32>
    %122 = vector.broadcast %120 : f32 to vector<1x128xf32>
    %123 = arith.mulf %122, %121 : vector<1x128xf32>
    %124 = arith.addf %119, %123 : vector<1x128xf32>
    %c21 = arith.constant 21 : index
    %125 = memref.load %arg1[%c21] : memref<40xf32, #tpu.memory_space<smem>>
    %126 = vector.extract_strided_slice %2 {offsets = [2, 0], sizes = [1, 128], strides = [1, 1]} : vector<4x128xf32> to vector<1x128xf32>
    %127 = vector.broadcast %125 : f32 to vector<1x128xf32>
    %128 = arith.mulf %127, %126 : vector<1x128xf32>
    %129 = arith.addf %124, %128 : vector<1x128xf32>
    %c29 = arith.constant 29 : index
    %130 = memref.load %arg1[%c29] : memref<40xf32, #tpu.memory_space<smem>>
    %131 = vector.extract_strided_slice %2 {offsets = [3, 0], sizes = [1, 128], strides = [1, 1]} : vector<4x128xf32> to vector<1x128xf32>
    %132 = vector.broadcast %130 : f32 to vector<1x128xf32>
    %133 = arith.mulf %132, %131 : vector<1x128xf32>
    %134 = arith.addf %129, %133 : vector<1x128xf32>
    %c6 = arith.constant 6 : index
    %135 = memref.load %arg1[%c6] : memref<40xf32, #tpu.memory_space<smem>>
    %136 = vector.extract_strided_slice %2 {offsets = [0, 0], sizes = [1, 128], strides = [1, 1]} : vector<4x128xf32> to vector<1x128xf32>
    %137 = vector.broadcast %135 : f32 to vector<1x128xf32>
    %138 = arith.mulf %137, %136 : vector<1x128xf32>
    %c38 = arith.constant 38 : index
    %139 = memref.load %arg1[%c38] : memref<40xf32, #tpu.memory_space<smem>>
    %140 = vector.broadcast %139 : f32 to vector<1x128xf32>
    %141 = arith.addf %138, %140 : vector<1x128xf32>
    %c14 = arith.constant 14 : index
    %142 = memref.load %arg1[%c14] : memref<40xf32, #tpu.memory_space<smem>>
    %143 = vector.extract_strided_slice %2 {offsets = [1, 0], sizes = [1, 128], strides = [1, 1]} : vector<4x128xf32> to vector<1x128xf32>
    %144 = vector.broadcast %142 : f32 to vector<1x128xf32>
    %145 = arith.mulf %144, %143 : vector<1x128xf32>
    %146 = arith.addf %141, %145 : vector<1x128xf32>
    %c22 = arith.constant 22 : index
    %147 = memref.load %arg1[%c22] : memref<40xf32, #tpu.memory_space<smem>>
    %148 = vector.extract_strided_slice %2 {offsets = [2, 0], sizes = [1, 128], strides = [1, 1]} : vector<4x128xf32> to vector<1x128xf32>
    %149 = vector.broadcast %147 : f32 to vector<1x128xf32>
    %150 = arith.mulf %149, %148 : vector<1x128xf32>
    %151 = arith.addf %146, %150 : vector<1x128xf32>
    %c30 = arith.constant 30 : index
    %152 = memref.load %arg1[%c30] : memref<40xf32, #tpu.memory_space<smem>>
    %153 = vector.extract_strided_slice %2 {offsets = [3, 0], sizes = [1, 128], strides = [1, 1]} : vector<4x128xf32> to vector<1x128xf32>
    %154 = vector.broadcast %152 : f32 to vector<1x128xf32>
    %155 = arith.mulf %154, %153 : vector<1x128xf32>
    %156 = arith.addf %151, %155 : vector<1x128xf32>
    %c7 = arith.constant 7 : index
    %157 = memref.load %arg1[%c7] : memref<40xf32, #tpu.memory_space<smem>>
    %158 = vector.extract_strided_slice %2 {offsets = [0, 0], sizes = [1, 128], strides = [1, 1]} : vector<4x128xf32> to vector<1x128xf32>
    %159 = vector.broadcast %157 : f32 to vector<1x128xf32>
    %160 = arith.mulf %159, %158 : vector<1x128xf32>
    %c39 = arith.constant 39 : index
    %161 = memref.load %arg1[%c39] : memref<40xf32, #tpu.memory_space<smem>>
    %162 = vector.broadcast %161 : f32 to vector<1x128xf32>
    %163 = arith.addf %160, %162 : vector<1x128xf32>
    %c15 = arith.constant 15 : index
    %164 = memref.load %arg1[%c15] : memref<40xf32, #tpu.memory_space<smem>>
    %165 = vector.extract_strided_slice %2 {offsets = [1, 0], sizes = [1, 128], strides = [1, 1]} : vector<4x128xf32> to vector<1x128xf32>
    %166 = vector.broadcast %164 : f32 to vector<1x128xf32>
    %167 = arith.mulf %166, %165 : vector<1x128xf32>
    %168 = arith.addf %163, %167 : vector<1x128xf32>
    %c23 = arith.constant 23 : index
    %169 = memref.load %arg1[%c23] : memref<40xf32, #tpu.memory_space<smem>>
    %170 = vector.extract_strided_slice %2 {offsets = [2, 0], sizes = [1, 128], strides = [1, 1]} : vector<4x128xf32> to vector<1x128xf32>
    %171 = vector.broadcast %169 : f32 to vector<1x128xf32>
    %172 = arith.mulf %171, %170 : vector<1x128xf32>
    %173 = arith.addf %168, %172 : vector<1x128xf32>
    %c31 = arith.constant 31 : index
    %174 = memref.load %arg1[%c31] : memref<40xf32, #tpu.memory_space<smem>>
    %175 = vector.extract_strided_slice %2 {offsets = [3, 0], sizes = [1, 128], strides = [1, 1]} : vector<4x128xf32> to vector<1x128xf32>
    %176 = vector.broadcast %174 : f32 to vector<1x128xf32>
    %177 = arith.mulf %176, %175 : vector<1x128xf32>
    %178 = arith.addf %173, %177 : vector<1x128xf32>
    %179 = tpu.concatenate %24, %46, %68, %90, %112, %134, %156, %178 in 0 : vector<1x128xf32>, vector<1x128xf32>, vector<1x128xf32>, vector<1x128xf32>, vector<1x128xf32>, vector<1x128xf32>, vector<1x128xf32>, vector<1x128xf32> -> vector<8x128xf32>
    %cst_2 = arith.constant 5.000000e-01 : f32
    %180 = vector.broadcast %cst_2 : f32 to vector<8x128xf32>
    %181 = arith.mulf %179, %180 : vector<8x128xf32>
    %cst_3 = arith.constant 0.707106769 : f32
    %182 = vector.broadcast %cst_3 : f32 to vector<8x128xf32>
    %183 = arith.mulf %179, %182 : vector<8x128xf32>
    %184 = math.erf %183 : vector<8x128xf32>
    %cst_4 = arith.constant 1.000000e+00 : f32
    %185 = vector.broadcast %cst_4 : f32 to vector<8x128xf32>
    %186 = arith.addf %184, %185 : vector<8x128xf32>
    %187 = arith.mulf %181, %186 : vector<8x128xf32>
    %c0_5 = arith.constant 0 : index
    %c0_6 = arith.constant 0 : index
    %188 = vector.load %arg3[%c0_5, %c0_6] : memref<8x128xf32, #tpu.memory_space<vmem>>, vector<8x128xf32>
    tpu.vector_store %arg3[%c0_5, %c0_6], %187 {strides = array<i32>} : memref<8x128xf32, #tpu.memory_space<vmem>>, vector<8x128xf32>,
    return
  }
  func.func @transform_0(%arg0: i32) -> i32 {
    %c0_i32 = arith.constant 0 : i32
    %c0_i32_0 = arith.constant 0 : i32
    return %c0_i32 : i32
  }
  func.func @transform_1(%arg0: i32) -> (i32, i32) {
    %c0_i32 = arith.constant 0 : i32
    %c0_i32_0 = arith.constant 0 : i32
    return %c0_i32, %arg0 : i32, i32
  }
  func.func @transform_2(%arg0: i32) -> (i32, i32) {
    %c0_i32 = arith.constant 0 : i32
    %c0_i32_0 = arith.constant 0 : i32
    return %c0_i32, %arg0 : i32, i32
  }
}

</mosaic_0001>

<bundles_post_ra>
// kernel: tpu_custom_call.1
= control target key start
LH: loop header
LB: loop body
LE: loop exit
PB: predicated region body
PF: predicated region fallthrough
CT: control target
= control target key end

     0   :  { %7 = vsyncpa [#allocation5], 0  ;;  %s618_s0 = inlined_call_operand.hbm [shape: f32[40], index: 0, kind: input, shape index: {}]   ;;  %s619_s1 = inlined_call_operand.hbm [shape: f32[4,128], index: 1, kind: input, shape index: {}]   ;;  %s620_s2 = inlined_call_operand.hbm [shape: f32[8,128], index: 2, kind: output, shape index: {}]  }
   0x1   :  { %8 = vsyncpa [#allocation3], 0 }
   0x2   :  { %9 = vsyncpa [#allocation4], 0  ;;  %s354_s11 = scalar_lea.hbm %s618_s0, 16 }
   0x3   :  { %p355_p0 = scmp.ne.s32.totalorder %s618_s0, %s354_s11  ;;  %p358_p1 = scmp.lt.u32.totalorder %s354_s11, %s618_s0 }
   0x5   :  { %p360_p2 = pnand %p358_p1, %p355_p0 }
   0x7   :  { %363 = shalt.err (!%p360_p2)
}
   0x8   :  { %s414_s16 = smov [#allocation2]   ;;  %s415_s19 = smov [#allocation6]  }
   0x9   :  { %17 = dma.hbm_to_smem %s618_s0, 16, %s414_s16, [#allocation5]  }
   0xa   :  { %s24_s20 = sshll.u32 %s415_s19, 4  ;;  %s364_s23 = scalar_lea.hbm %s619_s1, 64  ;;  %s25_s20 = int_to_ptr.vmem [resolvable:$true] %s24_s20 }
   0xb   :  { %p365_p3 = scmp.ne.s32.totalorder %s619_s1, %s364_s23  ;;  %p368_p4 = scmp.lt.u32.totalorder %s364_s23, %s619_s1 }
   0xd   :  { %p370_p5 = pnand %p368_p4, %p365_p3 }
   0xf   :  { %373 = shalt.err (!%p370_p5)
}
  0x10   :  { %s374_s28 = scalar_lea.vmem %s25_s20, 64  ;;  %p379_p7 = scmp.lt.s32.totalorder %s25_s20, %s25_s20 }
  0x11   :  { %p375_p6 = scmp.ne.s32.totalorder %s25_s20, %s374_s28  ;;  %p380_p8 = scmp.lt.s32.totalorder %s374_s28, %s374_s28 }
  0x13   :  { %p381_p9 = por %p380_p8, %p379_p7 }
  0x15   :  { %p382_p10 = pnand %p381_p9, %p375_p6 }
  0x17   :  { %385 = shalt.err (!%p382_p10)
}
  0x18   :  { %27 = dma.hbm_to_vmem [thread:$0]  %s619_s1, 64, %s25_s20, [#allocation3]  }
  0x19   :  { %408 = dma.done.wait [#allocation5], 16  }
  0x1a   :  { %409 = vsyncadd [#allocation5], 4294967280 }
  0x1b   :  { %410 = dma.done.wait [#allocation3], 64  }
  0x1c   :  { %411 = vsyncadd [#allocation3], 4294967232 }
  0x1d   :  { %34 = sfence }
  0x1e   :  { %s37_s30 = sld [smem:[#allocation2]]  ;;  %v35_v0 = vld [vmem:[#allocation6] sm:$0xf]  ;;  %s314_s7 = sld [smem:[#allocation2 + $0x1]]  ;;  %vm274_vm0 = vcmask 1040384   ;;  %vm276_vm1 = vcmask 1041408  }
  0x1f   :  { %s310_s3 = sld [smem:[#allocation2 + $0x20]]  ;;  %s456_s8 = sld [smem:[#allocation2 + $0x21]]  ;;  %v464_v1 = vmax.f32 %v35_v0, 0.0  ;;  %vm278_vm2 = vcmask 1042432   ;;  %vm280_vm3 = vcmask 1043456   ;;  %vm282_vm4 = vcmask 1044480  }
  0x20   :  { %s311_s4 = sld [smem:[#allocation2 + $0x8]]  ;;  %s458_s9 = sld [smem:[#allocation2 + $0x9]]  ;;  %vm284_vm5 = vcmask 1045504   ;;  %vm286_vm6 = vcmask 1046528  }
  0x21   :  { %s312_s5 = sld [smem:[#allocation2 + $0x10]]  ;;  %s460_s10 = sld [smem:[#allocation2 + $0x11]] }
  0x22   :  { %s313_s6 = sld [smem:[#allocation2 + $0x18]]  ;;  %s462_s11 = sld [smem:[#allocation2 + $0x19]] }
  0x23   :  { %s466_s1 = sld [smem:[#allocation2 + $0x2]]  ;;  %s479_s16 = sld [smem:[#allocation2 + $0x3]] }
  0x24   :  { %s468_s12 = sld [smem:[#allocation2 + $0x22]]  ;;  %v38_v2 = vstv %s37_s30  ;;  %v65_v10 = vstv %s314_s7  ;;  %s484_s17 = sld [smem:[#allocation2 + $0x23]] }
  0x25   :  { %v41_v3 = vstv %s310_s3  ;;  %s470_s13 = sld [smem:[#allocation2 + $0xa]]  ;;  %v39_v4 = vmul.f32 %v38_v2, %v464_v1  ;;  %v66_v13 = vmul.f32 %v65_v10, %v464_v1  ;;  %v68_v14 = vstv %s456_s8  ;;  %s488_s18 = sld [smem:[#allocation2 + $0xb]] }
  0x26   :  { %s472_s14 = sld [smem:[#allocation2 + $0x12]]  ;;  %v44_v5 = vstv %s311_s4  ;;  %v71_v17 = vstv %s458_s9  ;;  %s490_s19 = sld [smem:[#allocation2 + $0x13]] }
  0x27   :  { %v51_v6 = vstv %s312_s5  ;;  %s475_s15 = sld [smem:[#allocation2 + $0x1a]]  ;;  %v45_v7 = vmul.f32 %v44_v5, %v464_v1  ;;  %v42_v11 = vadd.f32 %v41_v3, %v39_v4  ;;  %v78_v18 = vstv %s460_s10  ;;  %s494_s20 = sld [smem:[#allocation2 + $0x1b]] }
  0x28   :  { %v52_v8 = vmul.f32 %v51_v6, %v464_v1  ;;  %v58_v9 = vstv %s313_s6  ;;  %v69_v20 = vadd.f32 %v68_v14, %v66_v13  ;;  %v72_v21 = vmul.f32 %v71_v17, %v464_v1  ;;  %s499_s21 = sld [smem:[#allocation2 + $0x4]]  ;;  %s520_s26 = sld [smem:[#allocation2 + $0x5]] }
  0x29   :  { %v59_v12 = vmul.f32 %v58_v9, %v464_v1  ;;  %v47_v15 = vrot.slane %v45_v7, 1  ;;  %v79_v22 = vmul.f32 %v78_v18, %v464_v1  ;;  %v85_v24 = vstv %s462_s11  ;;  %s501_s22 = sld [smem:[#allocation2 + $0x24]]  ;;  %s524_s27 = sld [smem:[#allocation2 + $0x25]] }
  0x2a   :  { %v54_v16 = vrot.slane %v52_v8, 2  ;;  %v92_v25 = vstv %s466_s1  ;;  %v95_v26 = vstv %s468_s12  ;;  %v74_v27 = vrot.slane %v72_v21, 1  ;;  %s505_s23 = sld [smem:[#allocation2 + $0xc]]  ;;  %s526_s28 = sld [smem:[#allocation2 + $0xd]] }
  0x2b   :  { %v61_v19 = vrot.slane %v59_v12, 3  ;;  %v49_v23 = vadd.f32 %v47_v15, %v42_v11  ;;  %v81_v28 = vrot.slane %v79_v22, 2  ;;  %v86_v29 = vmul.f32 %v85_v24, %v464_v1  ;;  %s510_s24 = sld [smem:[#allocation2 + $0x14]]  ;;  %s533_s0 = sld [smem:[#allocation2 + $0x15]] }
  0x2c   :  { %v93_v30 = vmul.f32 %v92_v25, %v464_v1  ;;  %v98_v32 = vstv %s470_s13  ;;  %v105_v33 = vstv %s472_s14  ;;  %s512_s25 = sld [smem:[#allocation2 + $0x1c]]  ;;  %v76_v35 = vadd.f32 %v74_v27, %v69_v20  ;;  %s535_s29 = sld [smem:[#allocation2 + $0x1d]] }
  0x2d   :  { %v56_v31 = vadd.f32 %v54_v16, %v49_v23  ;;  %v112_v34 = vstv %s475_s15  ;;  %v88_v36 = vrot.slane %v86_v29, 3  ;;  %v99_v38 = vmul.f32 %v98_v32, %v464_v1  ;;  %s541_s30 = sld [smem:[#allocation2 + $0x6]]  ;;  %s562_s7 = sld [smem:[#allocation2 + $0x7]] }
  0x2e   :  { %v96_v37 = vadd.f32 %v95_v26, %v93_v30  ;;  %v106_v40 = vmul.f32 %v105_v33, %v464_v1  ;;  %v113_v41 = vmul.f32 %v112_v34, %v464_v1  ;;  %v119_v42 = vstv %s479_s16  ;;  %s543_s3 = sld [smem:[#allocation2 + $0x26]]  ;;  %s567_s8 = sld [smem:[#allocation2 + $0x27]] }
  0x2f   :  { %v515_v39 = vadd.f32 %v61_v19, %v56_v31  ;;  %v83_v43 = vadd.f32 %v81_v28, %v76_v35  ;;  %v101_v44 = vrot.slane %v99_v38, 1  ;;  %v120_v45 = vmul.f32 %v119_v42, %v464_v1  ;;  %s547_s4 = sld [smem:[#allocation2 + $0xe]]  ;;  %s570_s9 = sld [smem:[#allocation2 + $0xf]] }
  0x30   :  { %v122_v46 = vstv %s484_s17  ;;  %v108_v47 = vrot.slane %v106_v40, 2  ;;  %v115_v48 = vrot.slane %v113_v41, 3  ;;  %v125_v49 = vstv %s488_s18  ;;  %s549_s5 = sld [smem:[#allocation2 + $0x16]]  ;;  %s574_s10 = sld [smem:[#allocation2 + $0x17]] }
  0x31   :  { %v132_v50 = vstv %s490_s19  ;;  %v530_v51 = vadd.f32 %v88_v36, %v83_v43  ;;  %v103_v52 = vadd.f32 %v101_v44, %v96_v37  ;;  %v123_v53 = vadd.f32 %v122_v46, %v120_v45  ;;  %s556_s6 = sld [smem:[#allocation2 + $0x1e]]  ;;  %s578_s11 = sld [smem:[#allocation2 + $0x1f]] }
  0x32   :  { %v126_v54 = vmul.f32 %v125_v49, %v464_v1  ;;  %v133_v55 = vmul.f32 %v132_v50, %v464_v1  ;;  %v139_v56 = vstv %s494_s20  ;;  %v146_v57 = vstv %s499_s21  ;;  %s416_s1 = smov [#allocation7]  }
  0x33   :  { %v149_v58 = vstv %s501_s22  ;;  %v110_v59 = vadd.f32 %v108_v47, %v103_v52  ;;  %v140_v61 = vmul.f32 %v139_v56, %v464_v1  ;;  %v147_v62 = vmul.f32 %v146_v57, %v464_v1  ;;  %s300_s12 = sshll.u32 %s416_s1, 4  ;;  %s301_s12 = int_to_ptr.vmem [resolvable:$true] %s300_s12 }
  0x34   :  { %v128_v60 = vrot.slane %v126_v54, 1  ;;  %v135_v63 = vrot.slane %v133_v55, 2  ;;  %v152_v0 = vstv %s505_s23  ;;  %v159_v2 = vstv %s510_s24  ;;  %s386_s13 = scalar_lea.vmem %s301_s12, 128  ;;  %p391_p12 = scmp.lt.s32.totalorder %s301_s12, %s301_s12 }
  0x35   :  { %v166_v3 = vstv %s512_s25  ;;  %v554_v4 = vadd.f32 %v115_v48, %v110_v59  ;;  %v142_v6 = vrot.slane %v140_v61, 3  ;;  %v150_v7 = vadd.f32 %v149_v58, %v147_v62  ;;  %p387_p11 = scmp.ne.s32.totalorder %s301_s12, %s386_s13  ;;  %p392_p13 = scmp.lt.s32.totalorder %s386_s13, %s386_s13 }
  0x36   :  { %v130_v5 = vadd.f32 %v128_v60, %v123_v53  ;;  %v153_v8 = vmul.f32 %v152_v0, %v464_v1  ;;  %v160_v9 = vmul.f32 %v159_v2, %v464_v1  ;;  %v167_v10 = vmul.f32 %v166_v3, %v464_v1 }
  0x37   :  { %v173_v11 = vstv %s520_s26  ;;  %v176_v14 = vstv %s524_s27  ;;  %v179_v15 = vstv %s526_s28  ;;  %v186_v22 = vstv %s533_s0  ;;  %p393_p0 = por %p392_p13, %p391_p12 }
  0x38   :  { %v137_v12 = vadd.f32 %v135_v63, %v130_v5  ;;  %v174_v13 = vmul.f32 %v173_v11, %v464_v1  ;;  %v155_v16 = vrot.slane %v153_v8, 1  ;;  %v162_v17 = vrot.slane %v160_v9, 2 }
  0x39   :  { %v169_v18 = vrot.slane %v167_v10, 3  ;;  %v180_v19 = vmul.f32 %v179_v15, %v464_v1  ;;  %v193_v23 = vstv %s535_s29  ;;  %v187_v26 = vmul.f32 %v186_v22, %v464_v1  ;;  %p394_p1 = pnand %p393_p0, %p387_p11 }
  0x3a   :  { %v144_v20 = vadd.f32 %v142_v6, %v137_v12  ;;  %v177_v21 = vadd.f32 %v176_v14, %v174_v13  ;;  %v157_v24 = vadd.f32 %v155_v16, %v150_v7  ;;  %v194_v27 = vmul.f32 %v193_v23, %v464_v1 }
  0x3b   :  { %v182_v25 = vrot.slane %v180_v19, 1  ;;  %v200_v28 = vstv %s541_s30  ;;  %v203_v29 = vstv %s543_s3  ;;  %v206_v30 = vstv %s547_s4 }
  0x3c   :  { %v213_v31 = vstv %s549_s5  ;;  %v164_v32 = vadd.f32 %v162_v17, %v157_v24  ;;  %v189_v34 = vrot.slane %v187_v26, 2  ;;  %v196_v35 = vrot.slane %v194_v27, 3 }
  0x3d   :  { %v184_v33 = vadd.f32 %v182_v25, %v177_v21  ;;  %v201_v36 = vmul.f32 %v200_v28, %v464_v1  ;;  %v207_v37 = vmul.f32 %v206_v30, %v464_v1  ;;  %v214_v38 = vmul.f32 %v213_v31, %v464_v1 }
  0x3e   :  { %v220_v40 = vstv %s556_s6  ;;  %v171_v41 = vadd.f32 %v169_v18, %v164_v32  ;;  %v227_v44 = vstv %s562_s7  ;;  %v230_v52 = vstv %s567_s8 }
  0x3f   :  { %v191_v42 = vadd.f32 %v189_v34, %v184_v33  ;;  %v221_v43 = vmul.f32 %v220_v40, %v464_v1  ;;  %v204_v45 = vadd.f32 %v203_v29, %v201_v36  ;;  %v209_v46 = vrot.slane %v207_v37, 1 }
  0x40   :  { %v216_v47 = vrot.slane %v214_v38, 2  ;;  %v228_v48 = vmul.f32 %v227_v44, %v464_v1  ;;  %v233_v53 = vstv %s570_s9  ;;  %v240_v57 = vstv %s574_s10 }
  0x41   :  { %v198_v49 = vadd.f32 %v196_v35, %v191_v42  ;;  %v223_v50 = vrot.slane %v221_v43, 3  ;;  %v211_v54 = vadd.f32 %v209_v46, %v204_v45  ;;  %v234_v56 = vmul.f32 %v233_v53, %v464_v1 }
  0x42   :  { %v231_v55 = vadd.f32 %v230_v52, %v228_v48  ;;  %v241_v58 = vmul.f32 %v240_v57, %v464_v1  ;;  %v247_v59 = vstv %s578_s11  ;;  %v254_v60 = vrot.slane %v530_v51, 7 }
  0x43   :  { %v257_v61 = vrot.slane %v554_v4, 6  ;;  %v218_v62 = vadd.f32 %v216_v47, %v211_v54  ;;  %v236_v63 = vrot.slane %v234_v56, 1  ;;  %v248_v0 = vmul.f32 %v247_v59, %v464_v1 }
  0x44   :  { %v260_v2 = vrot.slane %v144_v20, 5  ;;  %v243_v3 = vrot.slane %v241_v58, 2  ;;  %v263_v5 = vrot.slane %v171_v41, 4  ;;  %v266_v6 = vrot.slane %v198_v49, 3 }
  0x45   :  { %v275_v7 = vsel %vm274_vm0, %v515_v39, %v254_v60  ;;  %v225_v8 = vadd.f32 %v223_v50, %v218_v62  ;;  %v238_v9 = vadd.f32 %v236_v63, %v231_v55  ;;  %v250_v10 = vrot.slane %v248_v0, 3 }
  0x46   :  { %v277_v11 = vsel %vm276_vm1, %v275_v7, %v257_v61 }
  0x47   :  { %v279_v51 = vsel %vm278_vm2, %v277_v11, %v260_v2  ;;  %v245_v12 = vadd.f32 %v243_v3, %v238_v9  ;;  %v269_v4 = vrot.slane %v225_v8, 2 }
  0x48   :  { %v281_v13 = vsel %vm280_vm3, %v279_v51, %v263_v5 }
  0x49   :  { %v283_v1 = vsel %vm282_vm4, %v281_v13, %v266_v6  ;;  %v252_v14 = vadd.f32 %v250_v10, %v245_v12 }
  0x4a   :  { %v285_v15 = vsel %vm284_vm5, %v283_v1, %v269_v4 }
  0x4b   :  { %v272_v16 = vrot.slane %v252_v14, 1 }
  0x4d   :  { %v287_v17 = vsel %vm286_vm6, %v285_v15, %v272_v16 }
  0x4e   :  { %v289_v39 = vmul.f32 0.70710677, %v287_v17  ;;  %v288_v18 = vmul.f32 0.5, %v287_v17 }
  0x50   :  { %352 = verf.f32 %v289_v39 }
  0x5a   :  { %v353_v19 = vpop.eup %352 }
  0x5b   :  { %v291_v20 = vadd.f32 1.0, %v353_v19 }
  0x5d   :  { %v292_v21 = vmul.f32 %v291_v20, %v288_v18 }
  0x5f   :  { %293 = vst [vmem:[#allocation7] sm:$0xff] %v292_v21 }
  0x60   :  { %397 = shalt.err (!%p394_p1)
}
  0x61   :  { %s398_s16 = scalar_lea.hbm %s620_s2, 128 }
  0x62   :  { %p399_p2 = scmp.ne.s32.totalorder %s620_s2, %s398_s16  ;;  %p402_p3 = scmp.lt.u32.totalorder %s398_s16, %s620_s2 }
  0x64   :  { %p404_p4 = pnand %p402_p3, %p399_p2 }
  0x66   :  { %407 = shalt.err (!%p404_p4)
}
  0x67   :  { %303 = dma.vmem_to_hbm [thread:$0]  %s301_s12, 128, %s620_s2, [#allocation4]  }
  0x68   :  { %412 = dma.done.wait [#allocation4], 128  }
  0x69   :  { %413 = vsyncadd [#allocation4], 4294967168 }
  0x6a   :  { %307 = vsyncpa [#allocation3], 1 }
  0x6b   :  { %308 = vsyncpa [#allocation4], 1 }
  0x6c   :  { %309 = vsyncpa [#allocation5], 1 }

</bundles_post_ra>
